<compile_context>
chip_gen: v7x
topology: tpu7x:2x2x1
jax: 0.10.0
libtpu: 0.0.40
codegen_flags: <defaults>
</compile_context>

<pallas_src>
import functools

import jax
import jax.numpy as jnp
from jax.experimental import pallas as pl
from jax.experimental.pallas import tpu as pltpu

KERNEL_SIZES = (3, 4, 5)
MAX_LEFT_PAD = max((k - 1) // 2 for k in KERNEL_SIZES)   # 2
MAX_RIGHT_PAD = max(k // 2 for k in KERNEL_SIZES)        # 2
N_WIN = MAX_LEFT_PAD + MAX_RIGHT_PAD + 1                 # 5 shared taps

_TILE_CANDIDATES = (1024, 512, 256, 128, 64, 32, 16, 8)


def _round_up(n, m):
    return -(-n // m) * m


def ngram_cnn_kernel(x_ref, w_ref, b_ref, out_ref, ngram_ref,
                     *, tile_t, n_win, d, n_k):
    """One (batch, T-tile) per grid step.

    x_ref:     (T_pad + n_win - 1, C_pad)  VMEM-resident padded row of batch b
    w_ref:     (n_win, C_pad, n_k * d)     packed conv weights (taps zero-padded)
    b_ref:     (1, n_k * d)                packed fp32 biases [b_k0 | b_k1 | b_k2]
    out_ref:   (1, tile_t, d)              max over the K relu'd conv outputs
    ngram_ref: (1, tile_t, n_k * d)        per-row [y_k0 | y_k1 | y_k2] slabs
    """
    ti = pl.program_id(1)
    t0 = pl.multiple_of(ti * tile_t, tile_t)

    # Haloed window of this tile, sliced out of the resident per-batch row.
    xwin = x_ref[pl.ds(t0, tile_t + n_win - 1), :]          # (tile_t+4, C_pad)

    # Unrolled tap loop: accumulate each shifted slice straight into the fp32
    # result through the MXU (no (tile_t, 5*C) concat intermediate).
    y = jnp.dot(xwin[0:tile_t, :], w_ref[0],
                preferred_element_type=jnp.float32) + b_ref[...]
    for j in range(1, n_win):
        y = y + jnp.dot(xwin[j:j + tile_t, :], w_ref[j],
                        preferred_element_type=jnp.float32)
    y = jnp.maximum(y, 0.0)                                  # (tile_t, K*D) f32

    # Row t of y is [y_k3[t] | y_k4[t] | y_k5[t]] -> directly the ngram layout.
    ngram_ref[...] = y[None].astype(ngram_ref.dtype)

    # Max-pool over kernel sizes == running max over the K lane-aligned slabs.
    out = y[:, :d]
    for ki in range(1, n_k):
        out = jnp.maximum(out, y[:, ki * d:(ki + 1) * d])
    out_ref[...] = out[None].astype(out_ref.dtype)


def pack_conv_weights(params, in_channels, kernel_dim, c_pad, d_pad,
                      compute_dtype):
    """Pack the K convs into one (N_WIN, C_pad, K*D_pad) weight + (1, K*D_pad) bias.

    Tap j of the packed weight multiplies x_pad[t + j]; conv k's taps sit at
    taps MAX_LEFT_PAD - (k-1)//2 + [0, k); all other taps / padded channels /
    padded output columns are zero, so results on real rows/columns are exact.
    """
    n_k = len(KERNEL_SIZES)
    w = jnp.zeros((N_WIN, c_pad, n_k * d_pad), jnp.float32)
    b = jnp.zeros((1, n_k * d_pad), jnp.float32)
    for ki, k in enumerate(KERNEL_SIZES):
        off = MAX_LEFT_PAD - (k - 1) // 2
        w = w.at[off:off + k, :in_channels,
                 ki * d_pad:ki * d_pad + kernel_dim].set(params[f"w{k}"])
        b = b.at[:, ki * d_pad:ki * d_pad + kernel_dim].set(params[f"b{k}"])
    return w.astype(compute_dtype), b


def _vmem_limit_bytes():
    """Generation-aware VMEM limit (falls back to a conservative 64 MiB)."""
    physical = None
    try:
        info = pltpu.get_tpu_info()
        physical = getattr(info, "vmem_capacity_bytes", None)
    except Exception:
        physical = None
    if not physical:
        physical = 64 * 1024 * 1024          # conservative (v7x per-core VMEM)
    return min(int(physical) * 3 // 4, 96 * 1024 * 1024)


def _choose_tile_t(seq_len, c_pad, d_pad, n_k, compute_bytes, out_bytes, batch):
    """Largest T-tile whose full per-step VMEM footprint fits the budget."""
    vmem_limit = _vmem_limit_bytes()
    budget = int(vmem_limit * 0.85)          # headroom for compiler scratch
    kd = n_k * d_pad
    # Double-buffered packed weight (constant index map may still double-buffer)
    # + bias.
    fixed = 2 * N_WIN * c_pad * kd * compute_bytes + 2 * kd * 4
    max_tile = max(8, _round_up(seq_len, 8))
    tile = 8
    for cand in _TILE_CANDIDATES:
        if cand > max_tile:
            continue
        t_pad = _round_up(seq_len, cand)
        x_res = 2 * (t_pad + N_WIN - 1) * c_pad * compute_bytes   # resident row
        outs = 2 * cand * (d_pad + kd) * out_bytes                # dbl-buffered outputs
        interm = (cand * kd * 4                                   # fp32 accumulator
                  + 2 * (cand + N_WIN - 1) * c_pad * compute_bytes)
        if fixed + x_res + outs + interm <= budget:
            tile = cand
            break
    # Megacore (v7x): keep >= 2 grid steps when B == 1 so both TCs have work.
    if batch == 1:
        while tile > 8 and _round_up(seq_len, tile) // tile < 2:
            tile //= 2
    return tile, vmem_limit


def init_params(key, in_channels, kernel_dim):
    """Deterministic Conv1d-style init: U(-1/sqrt(C*k), 1/sqrt(C*k))."""
    params = {}
    for k in KERNEL_SIZES:
        key, kw, kb = jax.random.split(key, 3)
        bound = 1.0 / jnp.sqrt(in_channels * k)
        params[f"w{k}"] = jax.random.uniform(
            kw, (k, in_channels, kernel_dim), jnp.float32, -bound, bound)
        params[f"b{k}"] = jax.random.uniform(
            kb, (1, kernel_dim), jnp.float32, -bound, bound)
    return params


def ngram_cnn_forward(x, params, *, compute_dtype=jnp.bfloat16, out_dtype=None):
    """x: (B, T, C) float. Returns resp dict mirroring the PyTorch module.

    compute_dtype: dtype of x / weights fed to the MXU (accumulation is fp32).
    out_dtype: storage dtype of out / ngram_features (default: compute_dtype;
        bf16 by default — an explicit accuracy/bandwidth trade-off).
    """
    if out_dtype is None:
        out_dtype = compute_dtype
    B, T, C = x.shape
    D = params[f"w{KERNEL_SIZES[0]}"].shape[-1]
    K = len(KERNEL_SIZES)

    # Lane-align channels and per-kernel output slabs.
    c_pad = _round_up(C, 128)
    d_pad = _round_up(D, 128)
    kd = K * d_pad

    compute_bytes = jnp.dtype(compute_dtype).itemsize
    out_bytes = jnp.dtype(out_dtype).itemsize
    tile_t, vmem_limit = _choose_tile_t(T, c_pad, d_pad, K,
                                        compute_bytes, out_bytes, B)
    t_pad = _round_up(T, tile_t)
    n_tiles = t_pad // tile_t

    w_packed, bias = pack_conv_weights(params, C, D, c_pad, d_pad,
                                       compute_dtype)

    # Cast + max-'same' pad (+ T/C alignment pad) in one XLA op; the cast
    # forces a copy anyway so the padding is effectively free.
    x_pad = jnp.pad(x.astype(compute_dtype),
                    ((0, 0),
                     (MAX_LEFT_PAD, MAX_RIGHT_PAD + t_pad - T),
                     (0, c_pad - C)))                  # (B, T_pad+4, C_pad)

    kernel = functools.partial(ngram_cnn_kernel, tile_t=tile_t, n_win=N_WIN,
                               d=d_pad, n_k=K)

    out_p, ngram_p = pl.pallas_call(
        kernel,
        out_shape=(
            jax.ShapeDtypeStruct((B, t_pad, d_pad), out_dtype),
            jax.ShapeDtypeStruct((B, t_pad, kd), out_dtype),
        ),
        grid=(B, n_tiles),
        in_specs=[
            # Per-batch padded row stays VMEM-resident across its T-tiles; the
            # pipeline's DMA overlaps with compute of the previous tiles.
            pl.BlockSpec((None, t_pad + N_WIN - 1, c_pad),
                         lambda b, t: (b, 0, 0)),
            # Packed weights / bias: constant index maps -> fetched once.
            pl.BlockSpec((N_WIN, c_pad, kd), lambda b, t: (0, 0, 0)),
            pl.BlockSpec((1, kd), lambda b, t: (0, 0)),
        ],
        out_specs=(
            pl.BlockSpec((1, tile_t, d_pad), lambda b, t: (b, t, 0)),
            pl.BlockSpec((1, tile_t, kd), lambda b, t: (b, t, 0)),
        ),
        compiler_params=pltpu.CompilerParams(
            dimension_semantics=("parallel", "parallel"),
            vmem_limit_bytes=int(vmem_limit)),
    )(x_pad, w_packed, bias)

    # Crop padding.  (B, T, K*D_pad) -> (B, T*K, D_pad) is a contiguous
    # metadata reshape; rows come out in PyTorch merge order [t0k0, t0k1, ...].
    out = out_p[:, :T, :D]
    ngram = ngram_p[:, :T, :].reshape(B, T * K, d_pad)[:, :, :D]

    # Inference path: dropout is identity (module only applies it in training).
    resp = {
        "out": out,                                  # (B, T, D)
        "aux": {
            "ngram_features": ngram,                 # (B, T*K, D)
            "layer_outs": [out],
            "layer_ngram_features": [ngram],
        },
    }
    return resp


def reference_forward(x, params, compute_dtype=jnp.float32):
    """Pure-JAX reference of the same-padded Conv1d + relu + ngram max-pool."""
    B, T, C = x.shape
    K = len(KERNEL_SIZES)
    xc = x.astype(compute_dtype)
    outs = []
    for k in KERNEL_SIZES:
        left, right = (k - 1) // 2, k // 2
        xp = jnp.pad(xc, ((0, 0), (left, right), (0, 0)))
        w = params[f"w{k}"].astype(compute_dtype)
        b = params[f"b{k}"]
        y = jnp.zeros((B, T, w.shape[-1]), jnp.float32)
        for j in range(k):
            y = y + jnp.einsum("btc,cd->btd", xp[:, j:j + T, :], w[j],
                               preferred_element_type=jnp.float32)
        outs.append(jax.nn.relu(y + b[None]))
    stacked = jnp.stack(outs, axis=2)                # (B, T, K, D)
    out = jnp.max(stacked, axis=2)                   # (B, T, D)
    ngram = stacked.reshape(B, T * K, -1)            # (B, T*K, D)
    return out, ngram


if __name__ == "__main__":
    # Config 1: batch=2, seq=8, in_channels=4, kernel_dim=32.
    B, T, C, D = 2, 8, 4, 32
    key = jax.random.PRNGKey(0)
    key, kx = jax.random.split(key)
    x = jax.random.normal(kx, (B, T, C), jnp.float32)
    params = init_params(key, in_channels=C, kernel_dim=D)
    K = len(KERNEL_SIZES)

    # fp32 path: tight check against the fp32 reference.
    resp32 = ngram_cnn_forward(x, params, compute_dtype=jnp.float32,
                               out_dtype=jnp.float32)
    out32 = jax.block_until_ready(resp32["out"])
    ngram32 = jax.block_until_ready(resp32["aux"]["ngram_features"])
    ref_out, ref_ngram = reference_forward(x, params, compute_dtype=jnp.float32)
    assert out32.shape == (B, T, D)
    assert ngram32.shape == (B, T * K, D)
    assert jnp.allclose(out32, ref_out, atol=2e-4, rtol=2e-4)
    assert jnp.allclose(ngram32, ref_ngram, atol=2e-4, rtol=2e-4)

    # bf16 fast path (default): bf16 inputs/weights/outputs, fp32 accumulate.
    resp16 = ngram_cnn_forward(x, params)
    out16 = jax.block_until_ready(resp16["out"]).astype(jnp.float32)
    ngram16 = jax.block_until_ready(
        resp16["aux"]["ngram_features"]).astype(jnp.float32)
    ref_out16, ref_ngram16 = reference_forward(x, params,
                                               compute_dtype=jnp.bfloat16)
    assert out16.shape == (B, T, D)
    assert ngram16.shape == (B, T * K, D)
    assert jnp.allclose(out16, ref_out16, atol=2e-2, rtol=2e-2)
    assert jnp.allclose(ngram16, ref_ngram16, atol=2e-2, rtol=2e-2)

    # Config 2: B=1 and T not a multiple of the tile -> exercises T padding,
    # output cropping and the B==1 megacore tile adjustment.
    B2, T2 = 1, 12
    key, kx2 = jax.random.split(key)
    x2 = jax.random.normal(kx2, (B2, T2, C), jnp.float32)
    resp2 = ngram_cnn_forward(x2, params, compute_dtype=jnp.float32,
                              out_dtype=jnp.float32)
    out2 = jax.block_until_ready(resp2["out"])
    ngram2 = jax.block_until_ready(resp2["aux"]["ngram_features"])
    ref_out2, ref_ngram2 = reference_forward(x2, params,
                                             compute_dtype=jnp.float32)
    assert out2.shape == (B2, T2, D)
    assert ngram2.shape == (B2, T2 * K, D)
    assert jnp.allclose(out2, ref_out2, atol=2e-4, rtol=2e-4)
    assert jnp.allclose(ngram2, ref_ngram2, atol=2e-4, rtol=2e-4)

    print("KERNEL_OK")
</pallas_src>

<mosaic_0001>
module attributes {stable_mosaic.version = 11 : i64} {
  func.func @ngram_cnn_kernel(%arg0: i32, %arg1: i32, %arg2: memref<1x12x128xf32, #tpu.memory_space<vmem>>, %arg3: memref<5x128x384xf32, #tpu.memory_space<vmem>>, %arg4: memref<1x384xf32, #tpu.memory_space<vmem>>, %arg5: memref<1x8x128xf32, #tpu.memory_space<vmem>>, %arg6: memref<1x8x384xf32, #tpu.memory_space<vmem>>) attributes {dimension_semantics = [#tpu.dimension_semantics<parallel>, #tpu.dimension_semantics<parallel>], iteration_bounds = array<i64: 2, 1>, scalar_prefetch = 0 : i64, scratch_operands = 0 : i64, tpu.core_type = #tpu.core_type<tc>, window_params = [{transform_indices = @transform_0, window_bounds = array<i64: 1, 12, 128>}, {pipeline_mode = #tpu.pipeline_mode<synchronous>, transform_indices = @transform_1, window_bounds = array<i64: 5, 128, 384>}, {pipeline_mode = #tpu.pipeline_mode<synchronous>, transform_indices = @transform_2, window_bounds = array<i64: 1, 384>}, {transform_indices = @transform_3, window_bounds = array<i64: 1, 8, 128>}, {transform_indices = @transform_4, window_bounds = array<i64: 1, 8, 384>}]} {
    %c8_i32 = arith.constant 8 : i32
    %0 = arith.muli %arg1, %c8_i32 : i32
    %1 = tpu.assume_multiple %0, 8 : i32
    %c0 = arith.constant 0 : index
    %2 = arith.index_cast %1 : i32 to index
    %c0_0 = arith.constant 0 : index
    %3 = vector.load %arg2[%c0, %2, %c0_0] : memref<1x12x128xf32, #tpu.memory_space<vmem>>, vector<1x12x128xf32>
    %4 = vector.shape_cast %3 : vector<1x12x128xf32> to vector<12x128xf32>
    %5 = vector.extract_strided_slice %4 {offsets = [0, 0], sizes = [8, 128], strides = [1, 1]} : vector<12x128xf32> to vector<8x128xf32>
    %c0_1 = arith.constant 0 : index
    %c0_2 = arith.constant 0 : index
    %c0_3 = arith.constant 0 : index
    %6 = vector.load %arg3[%c0_1, %c0_2, %c0_3] : memref<5x128x384xf32, #tpu.memory_space<vmem>>, vector<1x128x384xf32>
    %7 = vector.shape_cast %6 : vector<1x128x384xf32> to vector<128x384xf32>
    %cst = arith.constant dense<0.000000e+00> : vector<8x384xf32>
    %8 = tpu.matmul %5, %7, %cst {dimension_numbers = #tpu.dot_dimension_numbers<[1], [0], [0], [1], [0, 0, 1, 1], [], []>} : vector<8x128xf32>, vector<128x384xf32>, vector<8x384xf32> -> vector<8x384xf32>
    %c0_4 = arith.constant 0 : index
    %c0_5 = arith.constant 0 : index
    %9 = vector.load %arg4[%c0_4, %c0_5] : memref<1x384xf32, #tpu.memory_space<vmem>>, vector<1x384xf32>
    %10 = vector.broadcast %9 : vector<1x384xf32> to vector<8x384xf32>
    %11 = arith.addf %8, %10 : vector<8x384xf32>
    %12 = vector.extract_strided_slice %4 {offsets = [1, 0], sizes = [8, 128], strides = [1, 1]} : vector<12x128xf32> to vector<8x128xf32>
    %c1 = arith.constant 1 : index
    %c0_6 = arith.constant 0 : index
    %c0_7 = arith.constant 0 : index
    %13 = vector.load %arg3[%c1, %c0_6, %c0_7] : memref<5x128x384xf32, #tpu.memory_space<vmem>>, vector<1x128x384xf32>
    %14 = vector.shape_cast %13 : vector<1x128x384xf32> to vector<128x384xf32>
    %cst_8 = arith.constant dense<0.000000e+00> : vector<8x384xf32>
    %15 = tpu.matmul %12, %14, %cst_8 {dimension_numbers = #tpu.dot_dimension_numbers<[1], [0], [0], [1], [0, 0, 1, 1], [], []>} : vector<8x128xf32>, vector<128x384xf32>, vector<8x384xf32> -> vector<8x384xf32>
    %16 = arith.addf %11, %15 : vector<8x384xf32>
    %17 = vector.extract_strided_slice %4 {offsets = [2, 0], sizes = [8, 128], strides = [1, 1]} : vector<12x128xf32> to vector<8x128xf32>
    %c2 = arith.constant 2 : index
    %c0_9 = arith.constant 0 : index
    %c0_10 = arith.constant 0 : index
    %18 = vector.load %arg3[%c2, %c0_9, %c0_10] : memref<5x128x384xf32, #tpu.memory_space<vmem>>, vector<1x128x384xf32>
    %19 = vector.shape_cast %18 : vector<1x128x384xf32> to vector<128x384xf32>
    %cst_11 = arith.constant dense<0.000000e+00> : vector<8x384xf32>
    %20 = tpu.matmul %17, %19, %cst_11 {dimension_numbers = #tpu.dot_dimension_numbers<[1], [0], [0], [1], [0, 0, 1, 1], [], []>} : vector<8x128xf32>, vector<128x384xf32>, vector<8x384xf32> -> vector<8x384xf32>
    %21 = arith.addf %16, %20 : vector<8x384xf32>
    %22 = vector.extract_strided_slice %4 {offsets = [3, 0], sizes = [8, 128], strides = [1, 1]} : vector<12x128xf32> to vector<8x128xf32>
    %c3 = arith.constant 3 : index
    %c0_12 = arith.constant 0 : index
    %c0_13 = arith.constant 0 : index
    %23 = vector.load %arg3[%c3, %c0_12, %c0_13] : memref<5x128x384xf32, #tpu.memory_space<vmem>>, vector<1x128x384xf32>
    %24 = vector.shape_cast %23 : vector<1x128x384xf32> to vector<128x384xf32>
    %cst_14 = arith.constant dense<0.000000e+00> : vector<8x384xf32>
    %25 = tpu.matmul %22, %24, %cst_14 {dimension_numbers = #tpu.dot_dimension_numbers<[1], [0], [0], [1], [0, 0, 1, 1], [], []>} : vector<8x128xf32>, vector<128x384xf32>, vector<8x384xf32> -> vector<8x384xf32>
    %26 = arith.addf %21, %25 : vector<8x384xf32>
    %27 = vector.extract_strided_slice %4 {offsets = [4, 0], sizes = [8, 128], strides = [1, 1]} : vector<12x128xf32> to vector<8x128xf32>
    %c4 = arith.constant 4 : index
    %c0_15 = arith.constant 0 : index
    %c0_16 = arith.constant 0 : index
    %28 = vector.load %arg3[%c4, %c0_15, %c0_16] : memref<5x128x384xf32, #tpu.memory_space<vmem>>, vector<1x128x384xf32>
    %29 = vector.shape_cast %28 : vector<1x128x384xf32> to vector<128x384xf32>
    %cst_17 = arith.constant dense<0.000000e+00> : vector<8x384xf32>
    %30 = tpu.matmul %27, %29, %cst_17 {dimension_numbers = #tpu.dot_dimension_numbers<[1], [0], [0], [1], [0, 0, 1, 1], [], []>} : vector<8x128xf32>, vector<128x384xf32>, vector<8x384xf32> -> vector<8x384xf32>
    %31 = arith.addf %26, %30 : vector<8x384xf32>
    %cst_18 = arith.constant 0.000000e+00 : f32
    %32 = vector.broadcast %cst_18 : f32 to vector<8x384xf32>
    %33 = arith.maximumf %31, %32 : vector<8x384xf32>
    %34 = vector.shape_cast %33 : vector<8x384xf32> to vector<1x8x384xf32>
    %c0_19 = arith.constant 0 : index
    %c0_20 = arith.constant 0 : index
    %c0_21 = arith.constant 0 : index
    %35 = vector.load %arg6[%c0_19, %c0_20, %c0_21] : memref<1x8x384xf32, #tpu.memory_space<vmem>>, vector<1x8x384xf32>
    tpu.vector_store %arg6[%c0_19, %c0_20, %c0_21], %34 {strides = array<i32>} : memref<1x8x384xf32, #tpu.memory_space<vmem>>, vector<1x8x384xf32>,
    %36 = vector.extract_strided_slice %33 {offsets = [0, 0], sizes = [8, 128], strides = [1, 1]} : vector<8x384xf32> to vector<8x128xf32>
    %37 = vector.extract_strided_slice %33 {offsets = [0, 128], sizes = [8, 128], strides = [1, 1]} : vector<8x384xf32> to vector<8x128xf32>
    %38 = arith.maximumf %36, %37 : vector<8x128xf32>
    %39 = vector.extract_strided_slice %33 {offsets = [0, 256], sizes = [8, 128], strides = [1, 1]} : vector<8x384xf32> to vector<8x128xf32>
    %40 = arith.maximumf %38, %39 : vector<8x128xf32>
    %41 = vector.shape_cast %40 : vector<8x128xf32> to vector<1x8x128xf32>
    %c0_22 = arith.constant 0 : index
    %c0_23 = arith.constant 0 : index
    %c0_24 = arith.constant 0 : index
    %42 = vector.load %arg5[%c0_22, %c0_23, %c0_24] : memref<1x8x128xf32, #tpu.memory_space<vmem>>, vector<1x8x128xf32>
    tpu.vector_store %arg5[%c0_22, %c0_23, %c0_24], %41 {strides = array<i32>} : memref<1x8x128xf32, #tpu.memory_space<vmem>>, vector<1x8x128xf32>,
    return
  }
  func.func @transform_0(%arg0: i32, %arg1: i32) -> (i32, i32, i32) {
    %c0_i32 = arith.constant 0 : i32
    %c0_i32_0 = arith.constant 0 : i32
    %c0_i32_1 = arith.constant 0 : i32
    return %arg0, %c0_i32, %c0_i32_0 : i32, i32, i32
  }
  func.func @transform_1(%arg0: i32, %arg1: i32) -> (i32, i32, i32) {
    %c0_i32 = arith.constant 0 : i32
    %c0_i32_0 = arith.constant 0 : i32
    %c0_i32_1 = arith.constant 0 : i32
    %c0_i32_2 = arith.constant 0 : i32
    return %c0_i32, %c0_i32_0, %c0_i32_1 : i32, i32, i32
  }
  func.func @transform_2(%arg0: i32, %arg1: i32) -> (i32, i32) {
    %c0_i32 = arith.constant 0 : i32
    %c0_i32_0 = arith.constant 0 : i32
    %c0_i32_1 = arith.constant 0 : i32
    return %c0_i32, %c0_i32_0 : i32, i32
  }
  func.func @transform_3(%arg0: i32, %arg1: i32) -> (i32, i32, i32) {
    %c0_i32 = arith.constant 0 : i32
    %c0_i32_0 = arith.constant 0 : i32
    return %arg0, %arg1, %c0_i32 : i32, i32, i32
  }
  func.func @transform_4(%arg0: i32, %arg1: i32) -> (i32, i32, i32) {
    %c0_i32 = arith.constant 0 : i32
    %c0_i32_0 = arith.constant 0 : i32
    return %arg0, %arg1, %c0_i32 : i32, i32, i32
  }
}

</mosaic_0001>

<bundles_post_ra>
// kernel: tpu_custom_call.1
= control target key start
LH: loop header
LB: loop body
LE: loop exit
PB: predicated region body
PF: predicated region fallthrough
CT: control target
= control target key end

     0   :  { %10 = vsyncpa [#allocation3], 0  ;;  %s2512_s0 = inlined_call_operand.vmem [shape: f32[2,12,128], index: 0, kind: input, shape index: {}]   ;;  %s2513_s1 = inlined_call_operand.hbm [shape: f32[5,128,384], index: 1, kind: input, shape index: {}]   ;;  %s2514_s2 = inlined_call_operand.vmem [shape: f32[1,384], index: 2, kind: input, shape index: {}]   ;;  %s2515_s3 = inlined_call_operand.hbm [shape: f32[2,8,128], index: 3, kind: output, shape index: {0}]   ;;  %s2516_s4 = inlined_call_operand.hbm [shape: f32[2,8,384], index: 4, kind: output, shape index: {1}]  }
   0x1   :  { %11 = vsyncpa [#allocation4], 0 }
   0x2   :  { %13 = vsyncpa [#allocation4 + $0x1], 0 }
   0x3   :  { %14 = vsyncpa [#allocation7], 0 }
   0x4   :  { %16 = vsyncpa [#allocation7 + $0x1], 0  ;;  %s2234_s15 = smov 0   ;;  %s2236_s16 = smov 0  }
   0x5   :  { %s2238_s17 = smov 0   ;;  %s2240_s18 = smov 0  }
   0x6   :  { %s2242_s19 = smov 0   ;;  %s2244_s20 = smov 0  }
   0x7 LB: > { %s1404_s21 = sadd.s32 4294967295, %s2199_s20   ;;  %s1405_s22 = sadd.s32 4294967294, %s2199_s20   ;;  %s2199_s20 = sphi %s2244_s20, %s22_s20   ;;  %s2195_s19 = sphi %s2242_s19, %s2534_s19   ;;  %s2191_s18 = sphi %s2240_s18, %s2533_s18   ;;  %s2187_s17 = sphi %s2238_s17, %s2532_s17   ;;  %s2183_s16 = sphi %s2236_s16, %s2531_s16   ;;  %s2179_s15 = sphi %s2234_s15, %s2530_s15  }
   0x8   : > { %s34_s23 = sadd.s32 1, %s2195_s19  ;;  %s111_s24 = sadd.s32 1, %s2187_s17 }
   0x9   : > { %p36_p0 = scmp.ge.s32.totalorder %s34_s23, 2  ;;  %p121_p1 = scmp.ne.s32.totalorder %s2187_s17, %s2183_s16 }
   0xa   : > { %p122_p2 = scmp.eq.s32.totalorder %s1404_s21, 1  ;;  %p127_p3 = scmp.ne.s32.totalorder %s2183_s16, %s2179_s15 }
   0xb   : > { %s2536_s23 = smov (%p36_p0, %s34_s23), 0  ;;  %p128_p5 = scmp.eq.s32.totalorder %s1405_s22, 1 }
   0xc   : > { %p2274_p4 = por %p122_p2, %p121_p1  ;;  %s106_s26 = ssub.s32 %s2195_s19, %s2536_s23 }
   0xd   : > { %p1406_p6 = scmp.ge.s32.totalorder %s2199_s20, 1  ;;  %p109_p7 = scmp.eq.s32.totalorder %s106_s26, 0 }
   0xe   : > { %s2521_s25 = scalar_select %p2274_p4, 1, 0 }
   0xf   : > { %p2281_p8 = por %p128_p5, %p127_p3  ;;  %p163_p9 = scmp.lt.s32.totalorder %s2199_s20, 3 }
  0x10   : > { %s2287_s28 = scalar_select %p109_p7, %s2187_s17, %s111_s24  }
  0x11   : > { %s2522_s27 = scalar_select %p2281_p8, 1, 0 }
  0x12   : > { %p2289_p10 = pnand %p1406_p6, %p163_p9  ;;  %p2293_p11 = scmp.eq.s32.totalorder %s1404_s21, 0 }
  0x13   : > { %s2201_s5 = smov [#allocation2]   ;;  %s2057_s10 = scalar_lea.hbm %s2513_s1, 30720 }
  0x14   : > { %s2523_s29 = scalar_select %p2289_p10, 1, 0 }
  0x15   : > { %s2524_s30 = scalar_select %p2293_p11, 1, 0 }
  0x16   : > { %p1989_p12 = pneg %p2289_p10  ;;  %s175_s6 = sshll.u32 %s2201_s5, 4  ;;  %s176_s6 = int_to_ptr.vmem [resolvable:$true] %s175_s6 }
  0x17   : > { %p2058_p0 = scmp.ne.s32.totalorder %s2513_s1, %s2057_s10  ;;  %p2064_p5 = scmp.lt.u32.totalorder %s2057_s10, %s2513_s1 }
  0x18   : > { %p2301_p13 = pnand %p2293_p11, %p1989_p12 }
  0x1a   : > { %p2059_p1 = pneg %p2301_p13 }
  0x1c   : > { %p2060_p2 = pnand %p2059_p1, %p2058_p0 }
  0x1e   : > { %p2061_p3 = pneg %p2060_p2 }
  0x20   : > { %p2066_p6 = pnand %p2064_p5, %p2061_p3 }
  0x22   : > { %2069 = shalt.err (!%p2066_p6)
}
  0x23   : > { %s2070_s21 = scalar_lea.vmem %s176_s6, 30720  ;;  %p2078_p8 = scmp.lt.s32.totalorder %s176_s6, %s176_s6 }
  0x24   : > { %p2071_p7 = scmp.ne.s32.totalorder %s176_s6, %s2070_s21  ;;  %p2079_p4 = scmp.lt.s32.totalorder %s2070_s21, %s2070_s21 }
  0x26   : > { %p2073_p9 = pnand %p2071_p7, %p2059_p1  ;;  %p2080_p11 = por %p2079_p4, %p2078_p8 }
  0x28   : > { %p2074_p12 = pneg %p2073_p9 }
  0x2a   : > { %p2081_p10 = pnand %p2080_p11, %p2074_p12 }
  0x2c   : > { %2084 = shalt.err (!%p2081_p10)
}
  0x2d   : > { %s2202_s22 = smov 384   ;;  %s2203_s24 = smov 24  }
  0x2e   : > { %1992 = dma.hbm_to_vmem [thread:$0]  (!%p2301_p13), %s2513_s1, 30720, %s176_s6, [#allocation3], %s2202_s22, %s2202_s22, %s2203_s24  }
  0x2f   : > { %p2526_p0 = scmp.ne.s32.totalorder %s2523_s29, 0 }
  0x30   : > { %p2527_p2 = scmp.ne.s32.totalorder (!%p2526_p0), %s2524_s30, 0 }
  0x31   : > { %202 = sbr.rel (%p2526_p0) target bundleno = 475 (0x1db), region = 32 }
  0x38   : > { %2166 = dma.done.wait (%p2527_p2), [#allocation3], 30720  }
  0x39   : > { %2168 = vsyncadd (%p2527_p2), [#allocation3], 4294936576  ;;  %v2204_v0 = vmov 0.0|0.0   ;;  %vm2205_vm0 = vmmov 0   ;;  %v2206_v1 = vmov 0.0   ;;  %v243_v2 = vld [vmem:[#allocation2 + $0x8] sm:$0xff] }
  0x3a   : > { %1712 = vmatprep.subr.bf16.mxu1 %v2204_v0  ;;  %1537 = vmatprep.mubr.msk.f32.mxu1 %vm2205_vm0, %v2206_v1  ;;  %v246_v3 = vld [vmem:[#allocation2 + $0x20] sm:$0xff]  ;;  %v244_v4 = vld [vmem:[#allocation2 + $0x10] sm:$0xff]  ;;  %v247_v6 = vld [vmem:[#allocation2 + $0x28] sm:$0xff]  ;;  %p233_p4 = scmp.lt.s32.totalorder %s2191_s18, 1  ;;  %vm895_vm1 = vcmask 1044480   ;;  %vm1093_vm2 = vcmask 1043456  }
  0x3b   : > { %371 = vmatprep.mubr.f32.mxu0 %v2206_v1  ;;  %v1680_v5 = vpack.c.bf16 %v246_v3, %v243_v2  ;;  %v242_v7 = vld [vmem:[#allocation2] sm:$0xff]  ;;  %v245_v8 = vld [vmem:[#allocation2 + $0x18] sm:$0xff]  ;;  %v1713_v9 = vpack.c.bf16 %v247_v6, %v244_v4  ;;  %v252_v12 = vld [vmem:[#allocation2 + $0x50] sm:$0xff]  ;;  %vm499_vm3 = vcmask 1046528   ;;  %vm697_vm4 = vcmask 1045504   ;;  %s2415_s9 = sand.u32 1, %s2183_s16  }
  0x3c   : > { %v1682_v10 = vpack.c.bf16 %v245_v8, %v242_v7  ;;  %v249_v11 = vld [vmem:[#allocation2 + $0x38] sm:$0xff]  ;;  %v250_v13 = vld [vmem:[#allocation2 + $0x40] sm:$0xff]  ;;  %v248_v16 = vld [vmem:[#allocation2 + $0x30] sm:$0xff]  ;;  %s2336_s29 = scalar_select %p233_p4, %s2191_s18, 1 }
  0x3d   : > { %1681 = vmatprep.subr.bf16.mxu0 %v1680_v5  ;;  %v1684_v14 = vpack.c.bf16 %v252_v12, %v249_v11  ;;  %v253_v15 = vld [vmem:[#allocation2 + $0x58] sm:$0xff]  ;;  %v251_v17 = vld [vmem:[#allocation2 + $0x48] sm:$0xff]  ;;  %1714 = vmatpush3.bf16.msra.mxu1 %v1713_v9  ;;  %v258_v21 = vld [vmem:[#allocation2 + $0x80] sm:$0xff]  ;;  %s1979_s12 = smul.u32 24, %s2415_s9  ;;  %s1411_s13 = sshll.u32 %s2415_s9, 3 }
  0x3e   : > { %1683 = vmatpush1.bf16.msra.mxu0 %v1682_v10  ;;  %v1716_v18 = vpack.c.bf16 %v253_v15, %v250_v13  ;;  %v1686_v19 = vpack.c.bf16 %v251_v17, %v248_v16  ;;  %v255_v20 = vld [vmem:[#allocation2 + $0x68] sm:$0xff]  ;;  %v256_v22 = vld [vmem:[#allocation2 + $0x70] sm:$0xff]  ;;  %1715 = vmatprep.subr.bf16.mxu1 %v2204_v0  ;;  %v254_v25 = vld [vmem:[#allocation2 + $0x60] sm:$0xff]  ;;  %s1419_s30 = sshll.u32 %s2336_s29, 4  ;;  %s1980_s14 = smul.u32 384, %s2191_s18 }
  0x3f   : > { %1685 = vmatprep.subr.bf16.mxu0 %v1684_v14  ;;  %v1688_v23 = vpack.c.bf16 %v258_v21, %v255_v20  ;;  %v259_v24 = vld [vmem:[#allocation2 + $0x88] sm:$0xff]  ;;  %v257_v26 = vld [vmem:[#allocation2 + $0x78] sm:$0xff]  ;;  %v264_v28 = vld [vmem:[#allocation2 + $0xb0] sm:$0xff]  ;;  %s237_s8 = scalar_lea.vmem %s2512_s0, %s1419_s30  ;;  %s232_s21 = scalar_lea.vmem [#allocation6], %s1979_s12 }
  0x40   : > { %v261_v27 = vld [vmem:[#allocation2 + $0x98] sm:$0xff]  ;;  %v1719_v29 = vpack.c.bf16 %v259_v24, %v256_v22  ;;  %v1690_v30 = vpack.c.bf16 %v257_v26, %v254_v25  ;;  %v262_v31 = vld [vmem:[#allocation2 + $0xa0] sm:$0xff]  ;;  %v260_v34 = vld [vmem:[#allocation2 + $0x90] sm:$0xff]  ;;  %s1287_s22 = sshll.u32 %s232_s21, 4  ;;  %s2426_s5 = scalar_lea.hbm %s2516_s4, %s1980_s14  ;;  %s2428_s22 = int_to_ptr.vmem [resolvable:$true] %s1287_s22 }
  0x41   : > { %1717 = vmatpush3.bf16.msra.mxu1 %v1716_v18  ;;  %v1692_v32 = vpack.c.bf16 %v264_v28, %v261_v27  ;;  %v265_v33 = vld [vmem:[#allocation2 + $0xb8] sm:$0xff]  ;;  %v263_v35 = vld [vmem:[#allocation2 + $0xa8] sm:$0xff]  ;;  %v270_v37 = vld [vmem:[#allocation2 + $0xe0] sm:$0xff]  ;;  %s1415_s29 = sshll.u32 %s2191_s18, 7  ;;  %s2431_s30 = scalar_lea.vmem [#allocation5], %s1411_s13 }
  0x42   : > { %1687 = vmatpush1.bf16.msra.mxu0 %v1686_v19  ;;  %1718 = vmatprep.subr.bf16.mxu1 %v2204_v0  ;;  %v267_v36 = vld [vmem:[#allocation2 + $0xc8] sm:$0xff]  ;;  %v1722_v38 = vpack.c.bf16 %v265_v33, %v262_v31  ;;  %v1694_v39 = vpack.c.bf16 %v263_v35, %v260_v34  ;;  %v268_v40 = vld [vmem:[#allocation2 + $0xd0] sm:$0xff]  ;;  %v266_v43 = vld [vmem:[#allocation2 + $0xc0] sm:$0xff]  ;;  %s1271_s6 = sshll.u32 %s2431_s30, 4  ;;  %s1257_s7 = scalar_lea.sflag [#allocation7], %s2415_s9  ;;  %s2465_s6 = int_to_ptr.vmem [resolvable:$true] %s1271_s6 }
  0x43   : > { %1689 = vmatprep.subr.bf16.mxu0 %v1688_v23  ;;  %v1696_v41 = vpack.c.bf16 %v270_v37, %v267_v36  ;;  %v271_v42 = vld [vmem:[#allocation2 + $0xe8] sm:$0xff]  ;;  %v269_v44 = vld [vmem:[#allocation2 + $0xd8] sm:$0xff]  ;;  %v276_v46 = vld [vmem:[#allocation2 + $0x110] sm:$0xff]  ;;  %p2528_p10 = scmp.ne.s32.totalorder %s2521_s25, 0  ;;  %s2207_s10 = smov [#allocation6]  }
  0x44   : > { %v273_v45 = vld [vmem:[#allocation2 + $0xf8] sm:$0xff]  ;;  %v1725_v47 = vpack.c.bf16 %v271_v42, %v268_v40  ;;  %v1698_v48 = vpack.c.bf16 %v269_v44, %v266_v43  ;;  %v274_v49 = vld [vmem:[#allocation2 + $0x100] sm:$0xff]  ;;  %v272_v52 = vld [vmem:[#allocation2 + $0xf0] sm:$0xff]  ;;  %s2089_s11 = sshll.u32 %s2207_s10, 4  ;;  %s2090_s11 = int_to_ptr.vmem [resolvable:$false] %s2089_s11 }
  0x45   : > { %1720 = vmatpush3.bf16.msra.mxu1 %v1719_v29  ;;  %v277_v50 = vld [vmem:[#allocation2 + $0x118] sm:$0xff]  ;;  %v1700_v51 = vpack.c.bf16 %v276_v46, %v273_v45  ;;  %v275_v53 = vld [vmem:[#allocation2 + $0x108] sm:$0xff]  ;;  %v2345_v54 = vld [vmem:[%s237_s8] sm:$0xff]  ;;  %s2091_s12 = scalar_lea.vmem %s2090_s11, 768  ;;  %p2092_p1 = scmp.lt.s32.totalorder %s2428_s22, %s2090_s11 }
  0x46   : > { %1691 = vmatpush1.bf16.msra.mxu0 %v1690_v30  ;;  %1721 = vmatprep.subr.bf16.mxu1 %v2204_v0  ;;  %v279_v55 = vld [vmem:[#allocation2 + $0x128] sm:$0xff]  ;;  %v282_v56 = vld [vmem:[#allocation2 + $0x140] sm:$0xff]  ;;  %v896_v58 = vrot.slane %v2345_v54, 3  ;;  %v1728_v60 = vpack.c.bf16 %v277_v50, %v274_v49  ;;  %v1702_v61 = vpack.c.bf16 %v275_v53, %v272_v52  ;;  %v280_v62 = vld [vmem:[#allocation2 + $0x130] sm:$0xff]  ;;  %v1094_v29 = vrot.slane %v2345_v54, 4 }
  0x47   : > { %1693 = vmatprep.subr.bf16.mxu0 %v1692_v32  ;;  %v2347_v57 = vld [vmem:[%s237_s8 + $0x8] sm:$0xf]  ;;  %v1704_v63 = vpack.c.bf16 %v282_v56, %v279_v55  ;;  %v278_v3 = vld [vmem:[#allocation2 + $0x120] sm:$0xff]  ;;  %v281_v4 = vld [vmem:[#allocation2 + $0x138] sm:$0xff]  ;;  %s2085_s8 = scalar_lea.vmem %s2428_s22, 384 }
  0x48   : > { %v897_v59 = vrot.slane %v2347_v57, 3  ;;  %v283_v2 = vld [vmem:[#allocation2 + $0x148] sm:$0xff]  ;;  %v285_v6 = vld [vmem:[#allocation2 + $0x158] sm:$0xff]  ;;  %v288_v7 = vld [vmem:[#allocation2 + $0x170] sm:$0xff]  ;;  %v1706_v9 = vpack.c.bf16 %v281_v4, %v278_v3  ;;  %v1095_v34 = vrot.slane %v2347_v57, 4  ;;  %p2086_p8 = scmp.ne.s32.totalorder %s2428_s22, %s2085_s8  ;;  %p2093_p3 = scmp.lt.s32.totalorder %s2091_s12, %s2085_s8 }
  0x49   : > { %1723 = vmatpush3.bf16.msra.mxu1 %v1722_v38  ;;  %v1731_v8 = vpack.c.bf16 %v283_v2, %v280_v62  ;;  %v286_v10 = vld [vmem:[#allocation2 + $0x160] sm:$0xff]  ;;  %v1708_v11 = vpack.c.bf16 %v288_v7, %v285_v6  ;;  %v289_v12 = vld [vmem:[#allocation2 + $0x178] sm:$0xff]  ;;  %v284_v13 = vld [vmem:[#allocation2 + $0x150] sm:$0xff] }
  0x4a   : > { %1695 = vmatpush1.bf16.msra.mxu0 %v1694_v39  ;;  %1724 = vmatprep.subr.bf16.mxu1 %v2204_v0  ;;  %v2352_v5 = vsel %vm895_vm1, %v896_v58, %v897_v59  ;;  %v287_v14 = vld [vmem:[#allocation2 + $0x168] sm:$0xff]  ;;  %v453_v16 = vld [vmem:[#allocation2 + $0x1a0] sm:$0xff]  ;;  %v1734_v17 = vpack.c.bf16 %v289_v12, %v286_v10  ;;  %v451_v19 = vld [vmem:[#allocation2 + $0x190] sm:$0xff]  ;;  %v2361_v37 = vsel %vm1093_vm2, %v1094_v29, %v1095_v34  ;;  %p2087_p11 = pnand %p2086_p8, %p2528_p10  ;;  %p2094_p5 = por %p2093_p3, %p2092_p1 }
  0x4b   : > { %1697 = vmatprep.subr.bf16.mxu0 %v1696_v41  ;;  %v450_v15 = vld [vmem:[#allocation2 + $0x188] sm:$0xff]  ;;  %v1710_v18 = vpack.c.bf16 %v287_v14, %v284_v13  ;;  %v449_v22 = vld [vmem:[#allocation2 + $0x180] sm:$0xff]  ;;  %v452_v23 = vld [vmem:[#allocation2 + $0x198] sm:$0xff] }
  0x4c   : > { %v1736_v20 = vpack.c.bf16 %v453_v16, %v450_v15  ;;  %v454_v21 = vld [vmem:[#allocation2 + $0x1a8] sm:$0xff]  ;;  %v456_v24 = vld [vmem:[#allocation2 + $0x1b8] sm:$0xff]  ;;  %v459_v25 = vld [vmem:[#allocation2 + $0x1d0] sm:$0xff]  ;;  %v1738_v27 = vpack.c.bf16 %v452_v23, %v449_v22  ;;  %p2088_p13 = pneg %p2087_p11 }
  0x4d   : > { %1726 = vmatpush3.bf16.msra.mxu1 %v1725_v47  ;;  %v1769_v26 = vpack.c.bf16 %v454_v21, %v451_v19  ;;  %v457_v28 = vld [vmem:[#allocation2 + $0x1c0] sm:$0xff]  ;;  %v1740_v30 = vpack.c.bf16 %v459_v25, %v456_v24  ;;  %v460_v31 = vld [vmem:[#allocation2 + $0x1d8] sm:$0xff]  ;;  %v455_v32 = vld [vmem:[#allocation2 + $0x1b0] sm:$0xff] }
  0x4e   : > { %1699 = vmatpush1.bf16.msra.mxu0 %v1698_v48  ;;  %1727 = vmatprep.subr.bf16.mxu1 %v2204_v0  ;;  %v458_v33 = vld [vmem:[#allocation2 + $0x1c8] sm:$0xff]  ;;  %v465_v36 = vld [vmem:[#allocation2 + $0x200] sm:$0xff]  ;;  %v1772_v38 = vpack.c.bf16 %v460_v31, %v457_v28  ;;  %v463_v40 = vld [vmem:[#allocation2 + $0x1f0] sm:$0xff]  ;;  %p2095_p6 = pnand %p2094_p5, %p2088_p13 }
  0x4f   : > { %1701 = vmatprep.subr.bf16.mxu0 %v1700_v51  ;;  %v462_v35 = vld [vmem:[#allocation2 + $0x1e8] sm:$0xff]  ;;  %v1742_v39 = vpack.c.bf16 %v458_v33, %v455_v32  ;;  %v461_v43 = vld [vmem:[#allocation2 + $0x1e0] sm:$0xff]  ;;  %v464_v44 = vld [vmem:[#allocation2 + $0x1f8] sm:$0xff] }
  0x50   : > { %v1744_v41 = vpack.c.bf16 %v465_v36, %v462_v35  ;;  %v466_v42 = vld [vmem:[#allocation2 + $0x208] sm:$0xff]  ;;  %v468_v45 = vld [vmem:[#allocation2 + $0x218] sm:$0xff]  ;;  %v471_v46 = vld [vmem:[#allocation2 + $0x230] sm:$0xff]  ;;  %v1746_v48 = vpack.c.bf16 %v464_v44, %v461_v43  ;;  %v500_v35 = vrot.slane %v2345_v54, 1  ;;  %v501_v36 = vrot.slane %v2347_v57, 1 }
  0x51   : > { %1729 = vmatpush3.bf16.msra.mxu1 %v1728_v60  ;;  %v1775_v47 = vpack.c.bf16 %v466_v42, %v463_v40  ;;  %v469_v49 = vld [vmem:[#allocation2 + $0x220] sm:$0xff]  ;;  %v1748_v50 = vpack.c.bf16 %v471_v46, %v468_v45  ;;  %v472_v51 = vld [vmem:[#allocation2 + $0x238] sm:$0xff]  ;;  %v467_v52 = vld [vmem:[#allocation2 + $0x210] sm:$0xff] }
  0x52   : > { %1703 = vmatpush1.bf16.msra.mxu0 %v1702_v61  ;;  %1730 = vmatprep.subr.bf16.mxu1 %v2204_v0  ;;  %v470_v53 = vld [vmem:[#allocation2 + $0x228] sm:$0xff]  ;;  %v477_v56 = vld [vmem:[#allocation2 + $0x260] sm:$0xff]  ;;  %v1778_v58 = vpack.c.bf16 %v472_v51, %v469_v49  ;;  %v475_v60 = vld [vmem:[#allocation2 + $0x250] sm:$0xff]  ;;  %v502_v45 = vsel %vm499_vm3, %v500_v35, %v501_v36 }
  0x53   : > { %1705 = vmatprep.subr.bf16.mxu0 %v1704_v63  ;;  %v474_v55 = vld [vmem:[#allocation2 + $0x248] sm:$0xff]  ;;  %v1750_v59 = vpack.c.bf16 %v470_v53, %v467_v52  ;;  %v473_v63 = vld [vmem:[#allocation2 + $0x240] sm:$0xff]  ;;  %v476_v2 = vld [vmem:[#allocation2 + $0x258] sm:$0xff] }
  0x54   : > { %v1752_v61 = vpack.c.bf16 %v477_v56, %v474_v55  ;;  %v478_v62 = vld [vmem:[#allocation2 + $0x268] sm:$0xff]  ;;  %v480_v3 = vld [vmem:[#allocation2 + $0x278] sm:$0xff]  ;;  %v483_v4 = vld [vmem:[#allocation2 + $0x290] sm:$0xff]  ;;  %v1754_v7 = vpack.c.bf16 %v476_v2, %v473_v63 }
  0x55   : > { %1732 = vmatpush3.bf16.msra.mxu1 %v1731_v8  ;;  %v1781_v6 = vpack.c.bf16 %v478_v62, %v475_v60  ;;  %v481_v8 = vld [vmem:[#allocation2 + $0x280] sm:$0xff]  ;;  %v484_v10 = vld [vmem:[#allocation2 + $0x298] sm:$0xff]  ;;  %v482_v12 = vld [vmem:[#allocation2 + $0x288] sm:$0xff] }
  0x56   : > { %1707 = vmatpush1.bf16.msra.mxu0 %v1706_v9  ;;  %1733 = vmatprep.subr.bf16.mxu1 %v2204_v0  ;;  %v1756_v9 = vpack.c.bf16 %v483_v4, %v480_v3  ;;  %v486_v13 = vld [vmem:[#allocation2 + $0x2a8] sm:$0xff]  ;;  %v489_v14 = vld [vmem:[#allocation2 + $0x2c0] sm:$0xff]  ;;  %v1784_v15 = vpack.c.bf16 %v484_v10, %v481_v8  ;;  %v488_v21 = vld [vmem:[#allocation2 + $0x2b8] sm:$0xff] }
  0x57   : > { %1709 = vmatprep.subr.bf16.mxu0 %v1708_v11  ;;  %v479_v11 = vld [vmem:[#allocation2 + $0x270] sm:$0xff]  ;;  %v490_v19 = vld [vmem:[#allocation2 + $0x2c8] sm:$0xff]  ;;  %v492_v22 = vld [vmem:[#allocation2 + $0x2d8] sm:$0xff] }
  0x58   : > { %v1758_v16 = vpack.c.bf16 %v482_v12, %v479_v11  ;;  %v495_v23 = vld [vmem:[#allocation2 + $0x2f0] sm:$0xff]  ;;  %v496_v28 = vld [vmem:[#allocation2 + $0x2f8] sm:$0xff]  ;;  %v650_v31 = vld [vmem:[#allocation2 + $0x308] sm:$0xff] }
  0x59   : > { %1735 = vmatpush3.bf16.msra.mxu1 %v1734_v17  ;;  %v487_v17 = vld [vmem:[#allocation2 + $0x2b0] sm:$0xff]  ;;  %v653_v32 = vld [vmem:[#allocation2 + $0x320] sm:$0xff]  ;;  %v654_v40 = vld [vmem:[#allocation2 + $0x328] sm:$0xff] }
  0x5a   : > { %1711 = vmatpush1.bf16.msra.mxu0 %v1710_v18  ;;  %1768 = vmatprep.subr.bf16.mxu1 %v2204_v0  ;;  %v1760_v18 = vpack.c.bf16 %v489_v14, %v486_v13  ;;  %v1787_v24 = vpack.c.bf16 %v490_v19, %v487_v17  ;;  %v491_v29 = vld [vmem:[#allocation2 + $0x2d0] sm:$0xff]  ;;  %v652_v42 = vld [vmem:[#allocation2 + $0x318] sm:$0xff]  ;;  %v658_v52 = vld [vmem:[#allocation2 + $0x348] sm:$0xff] }
  0x5b   : > { %1737 = vmatprep.subr.bf16.mxu0 %v1736_v20  ;;  %v485_v20 = vld [vmem:[#allocation2 + $0x2a0] sm:$0xff]  ;;  %v656_v43 = vld [vmem:[#allocation2 + $0x338] sm:$0xff]  ;;  %v659_v44 = vld [vmem:[#allocation2 + $0x350] sm:$0xff] }
  0x5c   : > { %1538 = vmatmul.mubr.f32.vlgmr.msra.gmra.mrb[0].mxu1 %v2345_v54  ;;  %v1762_v25 = vpack.c.bf16 %v488_v21, %v485_v20  ;;  %v1796_v49 = vpack.c.bf16 %v659_v44, %v656_v43  ;;  %v655_v51 = vld [vmem:[#allocation2 + $0x330] sm:$0xff]  ;;  %v662_v53 = vld [vmem:[#allocation2 + $0x368] sm:$0xff]  ;;  %v665_v55 = vld [vmem:[#allocation2 + $0x380] sm:$0xff] }
  0x5d   : > { %372 = vmatmul.mubr.f32.vlgmr.msra.gmra.mrb[0].mxu0 %v2345_v54  ;;  %1770 = vmatpush3.bf16.msra.mxu1 %v1769_v26  ;;  %v493_v26 = vld [vmem:[#allocation2 + $0x2e0] sm:$0xff]  ;;  %v1800_v60 = vpack.c.bf16 %v665_v55, %v662_v53  ;;  %v664_v63 = vld [vmem:[#allocation2 + $0x378] sm:$0xff]  ;;  %v671_v3 = vld [vmem:[#allocation2 + $0x3b0] sm:$0xff]  ;;  %v698_v53 = vrot.slane %v2345_v54, 2  ;;  %v699_v55 = vrot.slane %v2347_v57, 2 }
  0x5e   : > { %1739 = vmatpush1.bf16.msra.mxu0 %v1738_v27  ;;  %1771 = vmatprep.subr.bf16.mxu1 %v2204_v0  ;;  %v1764_v27 = vpack.c.bf16 %v495_v23, %v492_v22  ;;  %v1790_v33 = vpack.c.bf16 %v496_v28, %v493_v26  ;;  %v661_v62 = vld [vmem:[#allocation2 + $0x360] sm:$0xff]  ;;  %v668_v2 = vld [vmem:[#allocation2 + $0x398] sm:$0xff]  ;;  %v667_v10 = vld [vmem:[#allocation2 + $0x390] sm:$0xff] }
  0x5f   : > { %1741 = vmatprep.subr.bf16.mxu0 %v1740_v30  ;;  %1572 = vmatprep.mubr.msk.f32.mxu1 %vm2205_vm0, %v2206_v1  ;;  %v494_v30 = vld [vmem:[#allocation2 + $0x2e8] sm:$0xff]  ;;  %v1804_v8 = vpack.c.bf16 %v671_v3, %v668_v2  ;;  %v677_v13 = vld [vmem:[#allocation2 + $0x3e0] sm:$0xff]  ;;  %v676_v20 = vld [vmem:[#allocation2 + $0x3d8] sm:$0xff]  ;;  %v700_v2 = vsel %vm697_vm4, %v698_v53, %v699_v55 }
  0x60   : > { %568 = vmatprep.mubr.f32.mxu0 %v2206_v1  ;;  %v1766_v34 = vpack.c.bf16 %v494_v30, %v491_v29  ;;  %v670_v11 = vld [vmem:[#allocation2 + $0x3a8] sm:$0xff]  ;;  %v673_v19 = vld [vmem:[#allocation2 + $0x3c0] sm:$0xff]  ;;  %v680_v21 = vld [vmem:[#allocation2 + $0x3f8] sm:$0xff] }
  0x61   : > { %1773 = vmatpush3.bf16.msra.mxu1 %v1772_v38  ;;  %v651_v38 = vld [vmem:[#allocation2 + $0x310] sm:$0xff]  ;;  %v674_v12 = vld [vmem:[#allocation2 + $0x3c8] sm:$0xff]  ;;  %v693_v44 = vld [vmem:[#allocation2 + $0x460] sm:$0xff] }
  0x62   : > { %1743 = vmatpush1.bf16.msra.mxu0 %v1742_v39  ;;  %1774 = vmatprep.subr.bf16.mxu1 %v2204_v0  ;;  %v1792_v39 = vpack.c.bf16 %v653_v32, %v650_v31  ;;  %v1825_v46 = vpack.c.bf16 %v654_v40, %v651_v38  ;;  %v1808_v17 = vpack.c.bf16 %v677_v13, %v674_v12  ;;  %v683_v22 = vld [vmem:[#allocation2 + $0x410] sm:$0xff]  ;;  %v682_v29 = vld [vmem:[#allocation2 + $0x408] sm:$0xff]  ;;  %v689_v31 = vld [vmem:[#allocation2 + $0x440] sm:$0xff] }
  0x63   : > { %1745 = vmatprep.subr.bf16.mxu0 %v1744_v41  ;;  %v649_v41 = vld [vmem:[#allocation2 + $0x300] sm:$0xff]  ;;  %v1812_v26 = vpack.c.bf16 %v683_v22, %v680_v21  ;;  %v679_v28 = vld [vmem:[#allocation2 + $0x3f0] sm:$0xff]  ;;  %v686_v30 = vld [vmem:[#allocation2 + $0x428] sm:$0xff] }
  0x64   : > { %v1816_v35 = vpack.c.bf16 %v689_v31, %v686_v30  ;;  %v690_v36 = vld [vmem:[#allocation2 + $0x448] sm:$0xff]  ;;  %v685_v38 = vld [vmem:[#allocation2 + $0x420] sm:$0xff]  ;;  %v692_v40 = vld [vmem:[#allocation2 + $0x458] sm:$0xff] }
  0x65   : > { %1776 = vmatpush3.bf16.msra.mxu1 %v1775_v47  ;;  %v1794_v47 = vpack.c.bf16 %v652_v42, %v649_v41  ;;  %v695_v41 = vld [vmem:[#allocation2 + $0x470] sm:$0xff]  ;;  %v858_v57 = vld [vmem:[#allocation2 + $0x4d8] sm:$0xff]  ;;  %v867_v22 = vld [vmem:[#allocation2 + $0x520] sm:$0xff] }
  0x66   : > { %1747 = vmatpush1.bf16.msra.mxu0 %v1746_v48  ;;  %1777 = vmatprep.subr.bf16.mxu1 %v2204_v0  ;;  %v657_v48 = vld [vmem:[#allocation2 + $0x340] sm:$0xff]  ;;  %v861_v13 = vld [vmem:[#allocation2 + $0x4f0] sm:$0xff]  ;;  %v886_v55 = vld [vmem:[#allocation2 + $0x5b8] sm:$0xff] }
  0x67   : > { %1749 = vmatprep.subr.bf16.mxu0 %v1748_v50  ;;  %v660_v50 = vld [vmem:[#allocation2 + $0x358] sm:$0xff]  ;;  %v873_v31 = vld [vmem:[#allocation2 + $0x550] sm:$0xff]  ;;  %v883_v53 = vld [vmem:[#allocation2 + $0x5a0] sm:$0xff] }
  0x68   : > { %v1828_v56 = vpack.c.bf16 %v660_v50, %v657_v48  ;;  %v694_v48 = vld [vmem:[#allocation2 + $0x468] sm:$0xff]  ;;  %v851_v50 = vld [vmem:[#allocation2 + $0x4a0] sm:$0xff] }
  0x69   : > { %1779 = vmatpush3.bf16.msra.mxu1 %v1778_v58  ;;  %v1798_v58 = vpack.c.bf16 %v658_v52, %v655_v51 }
  0x6a   : > { %1751 = vmatpush1.bf16.msra.mxu0 %v1750_v59  ;;  %1780 = vmatprep.subr.bf16.mxu1 %v2204_v0  ;;  %v663_v59 = vld [vmem:[#allocation2 + $0x370] sm:$0xff] }
  0x6b   : > { %1753 = vmatprep.subr.bf16.mxu0 %v1752_v61  ;;  %v666_v61 = vld [vmem:[#allocation2 + $0x388] sm:$0xff] }
  0x6c   : > { %v1831_v4 = vpack.c.bf16 %v666_v61, %v663_v59  ;;  %v852_v59 = vld [vmem:[#allocation2 + $0x4a8] sm:$0xff]  ;;  %v850_v61 = vld [vmem:[#allocation2 + $0x498] sm:$0xff] }
  0x6d   : > { %1782 = vmatpush3.bf16.msra.mxu1 %v1781_v6  ;;  %v1802_v6 = vpack.c.bf16 %v664_v63, %v661_v62  ;;  %v854_v62 = vld [vmem:[#allocation2 + $0x4b8] sm:$0xff]  ;;  %v857_v63 = vld [vmem:[#allocation2 + $0x4d0] sm:$0xff] }
  0x6e   : > { %1755 = vmatpush1.bf16.msra.mxu0 %v1754_v7  ;;  %1783 = vmatprep.subr.bf16.mxu1 %v2204_v0  ;;  %v669_v7 = vld [vmem:[#allocation2 + $0x3a0] sm:$0xff]  ;;  %v1852_v54 = vpack.c.bf16 %v857_v63, %v854_v62  ;;  %v894_v63 = vld [vmem:[#allocation2 + $0x5f8] sm:$0xff] }
  0x6f   : > { %1757 = vmatprep.subr.bf16.mxu0 %v1756_v9  ;;  %v672_v9 = vld [vmem:[#allocation2 + $0x3b8] sm:$0xff] }
  0x70   : > { %v1834_v14 = vpack.c.bf16 %v672_v9, %v669_v7  ;;  %v853_v7 = vld [vmem:[#allocation2 + $0x4b0] sm:$0xff]  ;;  %v860_v9 = vld [vmem:[#allocation2 + $0x4e8] sm:$0xff] }
  0x71   : > { %1785 = vmatpush3.bf16.msra.mxu1 %v1784_v15  ;;  %v1806_v15 = vpack.c.bf16 %v670_v11, %v667_v10  ;;  %v863_v10 = vld [vmem:[#allocation2 + $0x500] sm:$0xff] }
  0x72   : > { %1759 = vmatpush1.bf16.msra.mxu0 %v1758_v16  ;;  %1786 = vmatprep.subr.bf16.mxu1 %v2204_v0  ;;  %v675_v16 = vld [vmem:[#allocation2 + $0x3d0] sm:$0xff] }
  0x73   : > { %1761 = vmatprep.subr.bf16.mxu0 %v1760_v18  ;;  %v678_v18 = vld [vmem:[#allocation2 + $0x3e8] sm:$0xff] }
  0x74   : > { %v1837_v23 = vpack.c.bf16 %v678_v18, %v675_v16  ;;  %v859_v16 = vld [vmem:[#allocation2 + $0x4e0] sm:$0xff]  ;;  %v866_v18 = vld [vmem:[#allocation2 + $0x518] sm:$0xff] }
  0x75   : > { %1788 = vmatpush3.bf16.msra.mxu1 %v1787_v24  ;;  %v1810_v24 = vpack.c.bf16 %v676_v20, %v673_v19  ;;  %v869_v19 = vld [vmem:[#allocation2 + $0x530] sm:$0xff] }
  0x76   : > { %1763 = vmatpush1.bf16.msra.mxu0 %v1762_v25  ;;  %1789 = vmatprep.subr.bf16.mxu1 %v2204_v0  ;;  %v681_v25 = vld [vmem:[#allocation2 + $0x400] sm:$0xff] }
  0x77   : > { %1765 = vmatprep.subr.bf16.mxu0 %v1764_v27  ;;  %v684_v27 = vld [vmem:[#allocation2 + $0x418] sm:$0xff] }
  0x78   : > { %v1840_v32 = vpack.c.bf16 %v684_v27, %v681_v25  ;;  %v865_v25 = vld [vmem:[#allocation2 + $0x510] sm:$0xff]  ;;  %v872_v27 = vld [vmem:[#allocation2 + $0x548] sm:$0xff] }
  0x79   : > { %1791 = vmatpush3.bf16.msra.mxu1 %v1790_v33  ;;  %v1814_v33 = vpack.c.bf16 %v682_v29, %v679_v28  ;;  %v875_v28 = vld [vmem:[#allocation2 + $0x560] sm:$0xff] }
  0x7a   : > { %1767 = vmatpush1.bf16.msra.mxu0 %v1766_v34  ;;  %1824 = vmatprep.subr.bf16.mxu1 %v2204_v0  ;;  %v687_v34 = vld [vmem:[#allocation2 + $0x430] sm:$0xff] }
  0x7b   : > { %1793 = vmatprep.subr.bf16.mxu0 %v1792_v39  ;;  %v688_v39 = vld [vmem:[#allocation2 + $0x438] sm:$0xff]  ;;  %v1843_v42 = vpack.c.bf16 %v690_v36, %v687_v34  ;;  %v871_v34 = vld [vmem:[#allocation2 + $0x540] sm:$0xff] }
  0x7c   : > { %1573 = vmatmul.mubr.f32.vlgmr.msra.gmra.mrb[0].mxu1 %v502_v45  ;;  %v1818_v43 = vpack.c.bf16 %v688_v39, %v685_v38  ;;  %v878_v36 = vld [vmem:[#allocation2 + $0x578] sm:$0xff]  ;;  %v881_v38 = vld [vmem:[#allocation2 + $0x590] sm:$0xff] }
  0x7d   : > { %569 = vmatmul.mubr.f32.vlgmr.msra.gmra.mrb[0].mxu0 %v502_v45  ;;  %1826 = vmatpush3.bf16.msra.mxu1 %v1825_v46  ;;  %v1820_v45 = vpack.c.bf16 %v695_v41, %v692_v40  ;;  %v696_v46 = vld [vmem:[#allocation2 + $0x478] sm:$0xff]  ;;  %v879_v41 = vld [vmem:[#allocation2 + $0x580] sm:$0xff] }
  0x7e   : > { %1795 = vmatpush1.bf16.msra.mxu0 %v1794_v47  ;;  %1827 = vmatprep.subr.bf16.mxu1 %v2204_v0  ;;  %v691_v47 = vld [vmem:[#allocation2 + $0x450] sm:$0xff]  ;;  %v1846_v51 = vpack.c.bf16 %v696_v46, %v693_v44  ;;  %v884_v46 = vld [vmem:[#allocation2 + $0x5a8] sm:$0xff] }
  0x7f   : > { %1797 = vmatprep.subr.bf16.mxu0 %v1796_v49  ;;  %1607 = vmatprep.mubr.msk.f32.mxu1 %vm2205_vm0, %v2206_v1  ;;  %v848_v49 = vld [vmem:[#allocation2 + $0x488] sm:$0xff]  ;;  %v1822_v52 = vpack.c.bf16 %v694_v48, %v691_v47  ;;  %v877_v44 = vld [vmem:[#allocation2 + $0x570] sm:$0xff]  ;;  %v887_v47 = vld [vmem:[#allocation2 + $0x5c0] sm:$0xff] }
  0x80   : > { %766 = vmatprep.mubr.f32.mxu0 %v2206_v1 }
  0x81   : > { %1829 = vmatpush3.bf16.msra.mxu1 %v1828_v56  ;;  %v849_v56 = vld [vmem:[#allocation2 + $0x490] sm:$0xff] }
  0x82   : > { %1799 = vmatpush1.bf16.msra.mxu0 %v1798_v58  ;;  %1830 = vmatprep.subr.bf16.mxu1 %v2204_v0  ;;  %v1848_v58 = vpack.c.bf16 %v851_v50, %v848_v49  ;;  %v1881_v3 = vpack.c.bf16 %v852_v59, %v849_v56  ;;  %v885_v50 = vld [vmem:[#allocation2 + $0x5b0] sm:$0xff]  ;;  %v890_v56 = vld [vmem:[#allocation2 + $0x5d8] sm:$0xff] }
  0x83   : > { %1801 = vmatprep.subr.bf16.mxu0 %v1800_v60  ;;  %v847_v60 = vld [vmem:[#allocation2 + $0x480] sm:$0xff] }
  0x85   : > { %1832 = vmatpush3.bf16.msra.mxu1 %v1831_v4  ;;  %v1850_v4 = vpack.c.bf16 %v850_v61, %v847_v60  ;;  %v1874_v60 = vpack.c.bf16 %v886_v55, %v883_v53  ;;  %v891_v61 = vld [vmem:[#allocation2 + $0x5e0] sm:$0xff]  ;;  %v1080_v53 = vld [vmem:[#allocation2 + $0x718] sm:$0xff]  ;;  %v1075_v55 = vld [vmem:[#allocation2 + $0x6f0] sm:$0xff] }
  0x86   : > { %1803 = vmatpush1.bf16.msra.mxu0 %v1802_v6  ;;  %1833 = vmatprep.subr.bf16.mxu1 %v2204_v0  ;;  %v855_v6 = vld [vmem:[#allocation2 + $0x4c0] sm:$0xff] }
  0x87   : > { %1805 = vmatprep.subr.bf16.mxu0 %v1804_v8  ;;  %v856_v8 = vld [vmem:[#allocation2 + $0x4c8] sm:$0xff]  ;;  %v1884_v11 = vpack.c.bf16 %v858_v57, %v855_v6  ;;  %v1049_v6 = vld [vmem:[#allocation2 + $0x620] sm:$0xff] }
  0x88   : > { %v1854_v12 = vpack.c.bf16 %v856_v8, %v853_v7  ;;  %v1047_v7 = vld [vmem:[#allocation2 + $0x610] sm:$0xff] }
  0x89   : > { %1835 = vmatpush3.bf16.msra.mxu1 %v1834_v14  ;;  %v1856_v14 = vpack.c.bf16 %v863_v10, %v860_v9  ;;  %v1050_v9 = vld [vmem:[#allocation2 + $0x628] sm:$0xff]  ;;  %v1045_v10 = vld [vmem:[#allocation2 + $0x600] sm:$0xff] }
  0x8a   : > { %1807 = vmatpush1.bf16.msra.mxu0 %v1806_v15  ;;  %1836 = vmatprep.subr.bf16.mxu1 %v2204_v0  ;;  %v864_v15 = vld [vmem:[#allocation2 + $0x508] sm:$0xff] }
  0x8b   : > { %1809 = vmatprep.subr.bf16.mxu0 %v1808_v17  ;;  %v862_v17 = vld [vmem:[#allocation2 + $0x4f8] sm:$0xff]  ;;  %v1887_v20 = vpack.c.bf16 %v864_v15, %v861_v13  ;;  %v1055_v13 = vld [vmem:[#allocation2 + $0x650] sm:$0xff] }
  0x8c   : > { %v1858_v21 = vpack.c.bf16 %v862_v17, %v859_v16  ;;  %v1053_v16 = vld [vmem:[#allocation2 + $0x640] sm:$0xff] }
  0x8d   : > { %1838 = vmatpush3.bf16.msra.mxu1 %v1837_v23  ;;  %v1860_v23 = vpack.c.bf16 %v869_v19, %v866_v18  ;;  %v1056_v18 = vld [vmem:[#allocation2 + $0x658] sm:$0xff]  ;;  %v1051_v19 = vld [vmem:[#allocation2 + $0x630] sm:$0xff] }
  0x8e   : > { %1811 = vmatpush1.bf16.msra.mxu0 %v1810_v24  ;;  %1839 = vmatprep.subr.bf16.mxu1 %v2204_v0  ;;  %v870_v24 = vld [vmem:[#allocation2 + $0x538] sm:$0xff] }
  0x8f   : > { %1813 = vmatprep.subr.bf16.mxu0 %v1812_v26  ;;  %v868_v26 = vld [vmem:[#allocation2 + $0x528] sm:$0xff]  ;;  %v1890_v29 = vpack.c.bf16 %v870_v24, %v867_v22  ;;  %v1061_v22 = vld [vmem:[#allocation2 + $0x680] sm:$0xff] }
  0x90   : > { %v1862_v30 = vpack.c.bf16 %v868_v26, %v865_v25  ;;  %v1059_v25 = vld [vmem:[#allocation2 + $0x670] sm:$0xff] }
  0x91   : > { %1841 = vmatpush3.bf16.msra.mxu1 %v1840_v32  ;;  %v1864_v32 = vpack.c.bf16 %v875_v28, %v872_v27  ;;  %v1062_v27 = vld [vmem:[#allocation2 + $0x688] sm:$0xff]  ;;  %v1057_v28 = vld [vmem:[#allocation2 + $0x660] sm:$0xff] }
  0x92   : > { %1815 = vmatpush1.bf16.msra.mxu0 %v1814_v33  ;;  %1842 = vmatprep.subr.bf16.mxu1 %v2204_v0  ;;  %v876_v33 = vld [vmem:[#allocation2 + $0x568] sm:$0xff] }
  0x93   : > { %1817 = vmatprep.subr.bf16.mxu0 %v1816_v35  ;;  %v874_v35 = vld [vmem:[#allocation2 + $0x558] sm:$0xff]  ;;  %v1893_v39 = vpack.c.bf16 %v876_v33, %v873_v31  ;;  %v1067_v31 = vld [vmem:[#allocation2 + $0x6b0] sm:$0xff]  ;;  %v1065_v33 = vld [vmem:[#allocation2 + $0x6a0] sm:$0xff] }
  0x94   : > { %v1866_v40 = vpack.c.bf16 %v874_v35, %v871_v34  ;;  %v1068_v35 = vld [vmem:[#allocation2 + $0x6b8] sm:$0xff] }
  0x95   : > { %1844 = vmatpush3.bf16.msra.mxu1 %v1843_v42  ;;  %v1868_v42 = vpack.c.bf16 %v881_v38, %v878_v36  ;;  %v1063_v36 = vld [vmem:[#allocation2 + $0x690] sm:$0xff]  ;;  %v1066_v38 = vld [vmem:[#allocation2 + $0x6a8] sm:$0xff] }
  0x96   : > { %1819 = vmatpush1.bf16.msra.mxu0 %v1818_v43  ;;  %1845 = vmatprep.subr.bf16.mxu1 %v2204_v0  ;;  %v882_v43 = vld [vmem:[#allocation2 + $0x598] sm:$0xff] }
  0x97   : > { %1821 = vmatprep.subr.bf16.mxu0 %v1820_v45  ;;  %v880_v45 = vld [vmem:[#allocation2 + $0x588] sm:$0xff]  ;;  %v1896_v48 = vpack.c.bf16 %v882_v43, %v879_v41  ;;  %v1946_v41 = vpack.c.bf16 %v1068_v35, %v1065_v33  ;;  %v1071_v43 = vld [vmem:[#allocation2 + $0x6d0] sm:$0xff] }
  0x98   : > { %v1870_v49 = vpack.c.bf16 %v880_v45, %v877_v44  ;;  %v1074_v44 = vld [vmem:[#allocation2 + $0x6e8] sm:$0xff]  ;;  %v1069_v45 = vld [vmem:[#allocation2 + $0x6c0] sm:$0xff] }
  0x99   : > { %1847 = vmatpush3.bf16.msra.mxu1 %v1846_v51  ;;  %v1872_v51 = vpack.c.bf16 %v887_v47, %v884_v46  ;;  %v1072_v46 = vld [vmem:[#allocation2 + $0x6d8] sm:$0xff] }
  0x9a   : > { %1823 = vmatpush1.bf16.msra.mxu0 %v1822_v52  ;;  %1880 = vmatprep.subr.bf16.mxu1 %v2204_v0  ;;  %v888_v52 = vld [vmem:[#allocation2 + $0x5c8] sm:$0xff]  ;;  %v1076_v47 = vld [vmem:[#allocation2 + $0x6f8] sm:$0xff] }
  0x9b   : > { %1849 = vmatprep.subr.bf16.mxu0 %v1848_v58  ;;  %v893_v58 = vld [vmem:[#allocation2 + $0x5f0] sm:$0xff]  ;;  %v1899_v59 = vpack.c.bf16 %v888_v52, %v885_v50  ;;  %v1922_v50 = vpack.c.bf16 %v1072_v46, %v1069_v45 }
  0x9c   : > { %1608 = vmatmul.mubr.f32.vlgmr.msra.gmra.mrb[0].mxu1 %v700_v2  ;;  %v1876_v62 = vpack.c.bf16 %v893_v58, %v890_v56  ;;  %v1078_v56 = vld [vmem:[#allocation2 + $0x708] sm:$0xff] }
  0x9d   : > { %767 = vmatmul.mubr.f32.vlgmr.msra.gmra.mrb[0].mxu0 %v700_v2  ;;  %1882 = vmatpush3.bf16.msra.mxu1 %v1881_v3  ;;  %v889_v2 = vld [vmem:[#allocation2 + $0x5d0] sm:$0xff]  ;;  %v892_v3 = vld [vmem:[#allocation2 + $0x5e8] sm:$0xff] }
  0x9e   : > { %1851 = vmatpush1.bf16.msra.mxu0 %v1850_v4  ;;  %1883 = vmatprep.subr.bf16.mxu1 %v2204_v0  ;;  %v1046_v4 = vld [vmem:[#allocation2 + $0x608] sm:$0xff]  ;;  %v1878_v57 = vpack.c.bf16 %v892_v3, %v889_v2  ;;  %v1081_v3 = vld [vmem:[#allocation2 + $0x720] sm:$0xff] }
  0x9f   : > { %1853 = vmatprep.subr.bf16.mxu0 %v1852_v54  ;;  %1642 = vmatprep.mubr.msk.f32.mxu1 %vm2205_vm0, %v2206_v1  ;;  %v1902_v54 = vpack.c.bf16 %v894_v63, %v891_v61  ;;  %v1904_v8 = vpack.c.bf16 %v1049_v6, %v1046_v4  ;;  %v1082_v58 = vld [vmem:[#allocation2 + $0x728] sm:$0xff]  ;;  %v1926_v61 = vpack.c.bf16 %v1078_v56, %v1075_v55  ;;  %v1084_v4 = vld [vmem:[#allocation2 + $0x738] sm:$0xff] }
  0xa0   : > { %964 = vmatprep.mubr.f32.mxu0 %v2206_v1  ;;  %v1086_v2 = vld [vmem:[#allocation2 + $0x748] sm:$0xff]  ;;  %v1088_v6 = vld [vmem:[#allocation2 + $0x758] sm:$0xff] }
  0xa1   : > { %1885 = vmatpush3.bf16.msra.mxu1 %v1884_v11  ;;  %v1048_v11 = vld [vmem:[#allocation2 + $0x618] sm:$0xff] }
  0xa2   : > { %1855 = vmatpush1.bf16.msra.mxu0 %v1854_v12  ;;  %1886 = vmatprep.subr.bf16.mxu1 %v2204_v0  ;;  %v1052_v12 = vld [vmem:[#allocation2 + $0x638] sm:$0xff]  ;;  %v1906_v15 = vpack.c.bf16 %v1048_v11, %v1045_v10  ;;  %v1087_v11 = vld [vmem:[#allocation2 + $0x750] sm:$0xff] }
  0xa3   : > { %1857 = vmatprep.subr.bf16.mxu0 %v1856_v14  ;;  %v1937_v14 = vpack.c.bf16 %v1050_v9, %v1047_v7  ;;  %v1908_v17 = vpack.c.bf16 %v1055_v13, %v1052_v12  ;;  %v1930_v7 = vpack.c.bf16 %v1084_v4, %v1081_v3  ;;  %v1092_v10 = vld [vmem:[#allocation2 + $0x778] sm:$0xff]  ;;  %v1090_v12 = vld [vmem:[#allocation2 + $0x768] sm:$0xff] }
  0xa5   : > { %1888 = vmatpush3.bf16.msra.mxu1 %v1887_v20  ;;  %v1054_v20 = vld [vmem:[#allocation2 + $0x648] sm:$0xff] }
  0xa6   : > { %1859 = vmatpush1.bf16.msra.mxu0 %v1858_v21  ;;  %1889 = vmatprep.subr.bf16.mxu1 %v2204_v0  ;;  %v1058_v21 = vld [vmem:[#allocation2 + $0x668] sm:$0xff]  ;;  %v1910_v24 = vpack.c.bf16 %v1054_v20, %v1051_v19 }
  0xa7   : > { %1861 = vmatprep.subr.bf16.mxu0 %v1860_v23  ;;  %v1940_v23 = vpack.c.bf16 %v1056_v18, %v1053_v16  ;;  %v1912_v26 = vpack.c.bf16 %v1061_v22, %v1058_v21 }
  0xa9   : > { %1891 = vmatpush3.bf16.msra.mxu1 %v1890_v29  ;;  %v1060_v29 = vld [vmem:[#allocation2 + $0x678] sm:$0xff] }
  0xaa   : > { %1863 = vmatpush1.bf16.msra.mxu0 %v1862_v30  ;;  %1892 = vmatprep.subr.bf16.mxu1 %v2204_v0  ;;  %v1064_v30 = vld [vmem:[#allocation2 + $0x698] sm:$0xff] }
  0xab   : > { %1865 = vmatprep.subr.bf16.mxu0 %v1864_v32  ;;  %v1914_v32 = vpack.c.bf16 %v1060_v29, %v1057_v28  ;;  %v1916_v34 = vpack.c.bf16 %v1067_v31, %v1064_v30 }
  0xad   : > { %1894 = vmatpush3.bf16.msra.mxu1 %v1893_v39  ;;  %v1070_v39 = vld [vmem:[#allocation2 + $0x6c8] sm:$0xff] }
  0xae   : > { %1867 = vmatpush1.bf16.msra.mxu0 %v1866_v40  ;;  %1895 = vmatprep.subr.bf16.mxu1 %v2204_v0  ;;  %v1073_v40 = vld [vmem:[#allocation2 + $0x6e0] sm:$0xff] }
  0xaf   : > { %1869 = vmatprep.subr.bf16.mxu0 %v1868_v42  ;;  %v1918_v42 = vpack.c.bf16 %v1066_v38, %v1063_v36 }
  0xb1   : > { %1897 = vmatpush3.bf16.msra.mxu1 %v1896_v48  ;;  %v1079_v48 = vld [vmem:[#allocation2 + $0x710] sm:$0xff] }
  0xb2   : > { %1871 = vmatpush1.bf16.msra.mxu0 %v1870_v49  ;;  %1898 = vmatprep.subr.bf16.mxu1 %v2204_v0  ;;  %v1949_v49 = vpack.c.bf16 %v1074_v44, %v1071_v43  ;;  %v1924_v52 = vpack.c.bf16 %v1079_v48, %v1076_v47 }
  0xb3   : > { %1873 = vmatprep.subr.bf16.mxu0 %v1872_v51  ;;  %v1077_v51 = vld [vmem:[#allocation2 + $0x700] sm:$0xff] }
  0xb5   : > { %1900 = vmatpush3.bf16.msra.mxu1 %v1899_v59  ;;  %v1085_v59 = vld [vmem:[#allocation2 + $0x740] sm:$0xff] }
  0xb6   : > { %1875 = vmatpush1.bf16.msra.mxu0 %v1874_v60  ;;  %1901 = vmatprep.subr.bf16.mxu1 %v2204_v0  ;;  %v1952_v60 = vpack.c.bf16 %v1080_v53, %v1077_v51  ;;  %v1928_v63 = vpack.c.bf16 %v1085_v59, %v1082_v58 }
  0xb7   : > { %1877 = vmatprep.subr.bf16.mxu0 %v1876_v62  ;;  %v1083_v62 = vld [vmem:[#allocation2 + $0x730] sm:$0xff] }
  0xb9   : > { %1903 = vmatpush3.bf16.msra.mxu1 %v1902_v54  ;;  %v1091_v54 = vld [vmem:[#allocation2 + $0x770] sm:$0xff] }
  0xba   : > { %1879 = vmatpush1.bf16.msra.mxu0 %v1878_v57  ;;  %1936 = vmatprep.subr.bf16.mxu1 %v2204_v0  ;;  %v1955_v57 = vpack.c.bf16 %v1086_v2, %v1083_v62  ;;  %v1932_v9 = vpack.c.bf16 %v1091_v54, %v1088_v6 }
  0xbb   : > { %1905 = vmatprep.subr.bf16.mxu0 %v1904_v8  ;;  %v1089_v8 = vld [vmem:[#allocation2 + $0x760] sm:$0xff] }
  0xbc   : > { %1643 = vmatmul.mubr.f32.vlgmr.msra.gmra.mrb[0].mxu1 %v2352_v5  ;;  %v1958_v13 = vpack.c.bf16 %v1092_v10, %v1089_v8 }
  0xbd   : > { %965 = vmatmul.mubr.f32.vlgmr.msra.gmra.mrb[0].mxu0 %v2352_v5  ;;  %1938 = vmatpush3.bf16.msra.mxu1 %v1937_v14  ;;  %v1943_v5 = vpack.c.bf16 %v1062_v27, %v1059_v25  ;;  %v1934_v14 = vpack.c.bf16 %v1090_v12, %v1087_v11 }
  0xbe   : > { %1907 = vmatpush1.bf16.msra.mxu0 %v1906_v15  ;;  %1939 = vmatprep.subr.bf16.mxu1 %v2204_v0  ;;  %v292_v15 = vlaneseq }
  0xbf   : > { %1909 = vmatprep.subr.bf16.mxu0 %v1908_v17  ;;  %1677 = vmatprep.mubr.msk.f32.mxu1 %vm2205_vm0, %v2206_v1 }
  0xc0   : > { %1162 = vmatprep.mubr.f32.mxu0 %v2206_v1  ;;  %v1920_v1 = vpack.c.bf16 %v1073_v40, %v1070_v39  ;;  %v293_v16 = vshrl.u32 %v292_v15, 7 }
  0xc1   : > { %1941 = vmatpush3.bf16.msra.mxu1 %v1940_v23 }
  0xc2   : > { %1911 = vmatpush1.bf16.msra.mxu0 %v1910_v24  ;;  %1942 = vmatprep.subr.bf16.mxu1 %v2204_v0  ;;  %v302_v17 = vsub.s32 2, %v293_v16  ;;  %v294_v18 = vsub.s32 0, %v293_v16  ;;  %v298_v19 = vsub.s32 1, %v293_v16 }
  0xc3   : > { %1913 = vmatprep.subr.bf16.mxu0 %v1912_v26 }
  0xc5   : > { %1944 = vmatpush3.bf16.msra.mxu1 %v1943_v5 }
  0xc6   : > { %1915 = vmatpush1.bf16.msra.mxu0 %v1914_v32  ;;  %1945 = vmatprep.subr.bf16.mxu1 %v2204_v0 }
  0xc7   : > { %1917 = vmatprep.subr.bf16.mxu0 %v1916_v34 }
  0xc9   : > { %1947 = vmatpush3.bf16.msra.mxu1 %v1946_v41 }
  0xca   : > { %1919 = vmatpush1.bf16.msra.mxu0 %v1918_v42  ;;  %1948 = vmatprep.subr.bf16.mxu1 %v2204_v0 }
  0xcb   : > { %1921 = vmatprep.subr.bf16.mxu0 %v1920_v1 }
  0xcd   : > { %1950 = vmatpush3.bf16.msra.mxu1 %v1949_v49 }
  0xce   : > { %1923 = vmatpush1.bf16.msra.mxu0 %v1922_v50  ;;  %1951 = vmatprep.subr.bf16.mxu1 %v2204_v0 }
  0xcf   : > { %1925 = vmatprep.subr.bf16.mxu0 %v1924_v52 }
  0xd1   : > { %1953 = vmatpush3.bf16.msra.mxu1 %v1952_v60 }
  0xd2   : > { %1927 = vmatpush1.bf16.msra.mxu0 %v1926_v61  ;;  %1954 = vmatprep.subr.bf16.mxu1 %v2204_v0 }
  0xd3   : > { %1929 = vmatprep.subr.bf16.mxu0 %v1928_v63 }
  0xd5   : > { %1956 = vmatpush3.bf16.msra.mxu1 %v1955_v57 }
  0xd6   : > { %1931 = vmatpush1.bf16.msra.mxu0 %v1930_v7  ;;  %1957 = vmatprep.subr.bf16.mxu1 %v2204_v0  ;;  %v290_v0 = vld [vmem:[%s2514_s2] sm:$0x7] }
  0xd7   : > { %1933 = vmatprep.subr.bf16.mxu0 %v1932_v9  ;;  %v303_v20 = vrot.slane %v290_v0, %v302_v17  ;;  %v295_v21 = vrot.slane %v290_v0, %v294_v18  ;;  %v299_v22 = vrot.slane %v290_v0, %v298_v19 }
  0xd9   : > { %1959 = vmatpush3.bf16.msra.mxu1 %v1958_v13 }
  0xda   : > { %1935 = vmatpush1.bf16.msra.mxu0 %v1934_v14 }
  0xdc   : > { %1678 = vmatmul.mubr.f32.vlgmr.msra.gmra.mrb[0].mxu1 %v2361_v37 }
  0xdd   : > { %1163 = vmatmul.mubr.f32.vlgmr.msra.gmra.mrb[0].mxu0 %v2361_v37 }
 0x1af   : > { %v1235_v23 = vpop.f32.mrb[0].mxu1 }
 0x1b0   : > { %v1164_v37 = vpop.f32.mrb[0].mxu0  ;;  %v1962_v24 = vadd.f32 %v1235_v23, %v303_v20  ;;  %v1679_v26 = vpop.f32.mrb[1].mxu1 }
 0x1b1   : > { %v1960_v25 = vadd.f32 %v1164_v37, %v295_v21  ;;  %v1166_v27 = vpop.f32.mrb[1].mxu0 }
 0x1b2   : > { %v1961_v28 = vadd.f32 %v1166_v27, %v299_v22  ;;  %v1244_v29 = vmax.f32 %v1962_v24, 0.0 }
 0x1b3   : > { %v1242_v30 = vmax.f32 %v1960_v25, 0.0 }
 0x1b4   : > { %v1243_v31 = vmax.f32 %v1961_v28, 0.0  ;;  %1247 = vst [vmem:[%s232_s21 + $0x10] sm:$0xff] %v1244_v29 }
 0x1b5   : > { %1245 = vst [vmem:[%s232_s21] sm:$0xff] %v1242_v30 }
 0x1b6   : > { %1246 = vst [vmem:[%s232_s21 + $0x8] sm:$0xff] %v1243_v31  ;;  %v1248_v5 = vmax.f32 %v1242_v30, %v1243_v31 }
 0x1b7   : > { %2098 = shalt.err (!%p2095_p6)
}
 0x1b8   : > { %s2099_s13 = scalar_lea.hbm %s2426_s5, 384  ;;  %s2103_s24 = scalar_lea.hbm %s2516_s4, 768 }
 0x1b9   : > { %p2100_p7 = scmp.ne.s32.totalorder %s2426_s5, %s2099_s13  ;;  %p2104_p0 = scmp.lt.u32.totalorder %s2426_s5, %s2516_s4 }
 0x1ba   : > { %p2105_p2 = scmp.lt.u32.totalorder %s2103_s24, %s2099_s13  ;;  %p2107_p8 = scmp.lt.u32.totalorder %s2099_s13, %s2426_s5 }
 0x1bb   : > { %p2101_p9 = pnand %p2100_p7, %p2528_p10 }
 0x1bc   : > { %p2106_p4 = por %p2105_p2, %p2104_p0 }
 0x1bd   : > { %p2102_p12 = pneg %p2101_p9 }
 0x1be   : > { %p2108_p11 = por %p2107_p8, %p2106_p4 }
 0x1c0   : > { %p2109_p13 = pnand %p2108_p11, %p2102_p12 }
 0x1c2   : > { %2112 = shalt.err (!%p2109_p13)
}
 0x1c3   : > { %1986 = dma.vmem_to_hbm [thread:$0]  (%p2528_p10), %s2428_s22, 384, %s2426_s5, %s1257_s7   ;;  %v1249_v32 = vmax.f32 %v1248_v5, %v1244_v29 }
 0x1c4   : > { %s2461_s12 = scalar_lea.hbm %s2515_s3, %s1415_s29  ;;  %s1252_s13 = scalar_lea.sflag [#allocation4], %s2415_s9 }
 0x1c5   : > { %1250 = vst [vmem:[%s2431_s30] sm:$0xff] %v1249_v32  ;;  %s2113_s14 = scalar_lea.vmem %s2465_s6, 128  ;;  %s2208_s22 = smov [#allocation5]  }
 0x1c6   : > { %p2114_p1 = scmp.ne.s32.totalorder %s2465_s6, %s2113_s14  ;;  %s2117_s18 = sshll.u32 %s2208_s22, 4  ;;  %s2118_s18 = int_to_ptr.vmem [resolvable:$false] %s2117_s18 }
 0x1c7   : > { %s2119_s5 = scalar_lea.vmem %s2118_s18, 256  ;;  %p2120_p6 = scmp.lt.s32.totalorder %s2465_s6, %s2118_s18 }
 0x1c8   : > { %p2115_p3 = pnand %p2114_p1, %p2528_p10  ;;  %p2121_p7 = scmp.lt.s32.totalorder %s2119_s5, %s2113_s14 }
 0x1ca   : > { %p2116_p5 = pneg %p2115_p3  ;;  %p2122_p9 = por %p2121_p7, %p2120_p6 }
 0x1cc   : > { %p2123_p12 = pnand %p2122_p9, %p2116_p5 }
 0x1ce   : > { %2126 = shalt.err (!%p2123_p12)
}
 0x1cf   : > { %s2127_s9 = scalar_lea.hbm %s2461_s12, 128  ;;  %s2131_s7 = scalar_lea.hbm %s2515_s3, 256 }
 0x1d0   : > { %p2128_p0 = scmp.ne.s32.totalorder %s2461_s12, %s2127_s9  ;;  %p2132_p8 = scmp.lt.u32.totalorder %s2461_s12, %s2515_s3 }
 0x1d1   : > { %p2133_p11 = scmp.lt.u32.totalorder %s2131_s7, %s2127_s9  ;;  %p2135_p1 = scmp.lt.u32.totalorder %s2127_s9, %s2461_s12 }
 0x1d2   : > { %p2129_p2 = pnand %p2128_p0, %p2528_p10 }
 0x1d3   : > { %p2134_p13 = por %p2133_p11, %p2132_p8 }
 0x1d4   : > { %p2130_p4 = pneg %p2129_p2 }
 0x1d5   : > { %p2136_p3 = por %p2135_p1, %p2134_p13 }
 0x1d7   : > { %p2137_p5 = pnand %p2136_p3, %p2130_p4 }
 0x1d9   : > { %2140 = shalt.err (!%p2137_p5)
}
 0x1da   : > { %1985 = dma.vmem_to_hbm [thread:$0]  (%p2528_p10), %s2465_s6, 128, %s2461_s12, %s1252_s13  }
 0x1db PF: > { %p2002_p6 = scmp.ge.s32.totalorder %s2199_s20, 2  ;;  %s1299_s26 = sand.u32 1, %s2179_s15  }
 0x1dc   : > { %p2529_p7 = scmp.ne.s32.totalorder %s2522_s27, 0  ;;  %s1300_s10 = scalar_lea.sflag [#allocation4], %s1299_s26 }
 0x1de   : > { %p1994_p9 = pnand %p2002_p6, %p2529_p7 }
 0x1e0   : > { %2170 = dma.done.wait (!%p1994_p9), %s1300_s10, 128  }
 0x1e1   : > { %2172 = vsyncadd (!%p1994_p9), %s1300_s10, 4294967168  ;;  %s1309_s8 = scalar_lea.sflag [#allocation7], %s1299_s26 }
 0x1e2   : > { %2174 = dma.done.wait (!%p1994_p9), %s1309_s8, 384  }
 0x1e3   : > { %2176 = vsyncadd (!%p1994_p9), %s1309_s8, 4294966912  ;;  %s22_s20 = sadd.s32 1, %s2199_s20   ;;  %s2530_s15 = smov %s2183_s16 }
 0x1e4   : > { %p19_p12 = scmp.ge.s32.totalorder %s22_s20, 4   ;;  %s2531_s16 = smov %s2187_s17 }
 0x1e5   : > { %s2532_s17 = smov %s2287_s28  ;;  %s2533_s18 = smov %s2195_s19 }
 0x1e6   : > { %s2534_s19 = smov %s2536_s23  ;;  %21 = sbr.rel (!%p19_p12) target bundleno = 7 (0x7), region = 94 }
 0x1ed   :  { %1314 = vsyncpa [#allocation3], 1 }
 0x1ee   :  { %1316 = vsyncpa [#allocation3 + $0x1], 1 }
 0x1ef   :  { %1317 = vsyncpa [#allocation4], 1 }
 0x1f0   :  { %1319 = vsyncpa [#allocation4 + $0x1], 1 }
 0x1f1   :  { %1320 = vsyncpa [#allocation7], 1 }
 0x1f2   :  { %1322 = vsyncpa [#allocation7 + $0x1], 1 }

</bundles_post_ra>
